<compile_context>
chip_gen: v5e
topology: v5e:2x2
jax: 0.10.0
libtpu: 0.0.40
codegen_flags: <defaults>
</compile_context>

<pallas_src>
import jax
import jax.numpy as jnp
from jax.experimental import pallas as pl
from jax.experimental.pallas import tpu as pltpu

# ---- module hyper-parameters (small, consistent with the PyTorch module) ----
B = 2            # batch
N = 8            # query sequence length
M = 8            # context sequence length (context=None -> context=x, M=N)
QUERY_DIM = 32
CONTEXT_DIM = 32
HEADS = 2
DIM_HEAD = 16
INNER_DIM = HEADS * DIM_HEAD          # 32
SCALE = DIM_HEAD ** (-0.5)
NEG_INF = -1e30


def cross_attention_kernel(xh_ref, ch_ref, maskb_ref, wq_ref, wk_ref, wv_ref,
                           wo_ref, bo_ref, o_ref):
    """Single invocation (no grid) — whole problem lives in VMEM.

    xh_ref   : (H, B*N, QUERY_DIM)    x broadcast over heads (wrapper-side)
    ch_ref   : (H, B*M, CONTEXT_DIM)  context broadcast over heads
    maskb_ref: (B*N, B*M)             additive bias: 0 same-batch, -1e30 cross
    wq_ref   : (H, QUERY_DIM, DIM_HEAD)   per-head, pre-transposed, scale folded
    wk_ref   : (H, CONTEXT_DIM, DIM_HEAD)
    wv_ref   : (H, CONTEXT_DIM, DIM_HEAD)
    wo_ref   : (H, DIM_HEAD, QUERY_DIM)
    bo_ref   : (1, QUERY_DIM)
    o_ref    : (B*N, QUERY_DIM)
    """
    # Head-batched q/k/v projections over all B*N (resp. B*M) rows at once.
    q = jnp.einsum('hnc,hcd->hnd', xh_ref[...], wq_ref[...],
                   preferred_element_type=jnp.float32)          # (H, B*N, d)
    k = jnp.einsum('hmc,hcd->hmd', ch_ref[...], wk_ref[...],
                   preferred_element_type=jnp.float32)          # (H, B*M, d)
    v = jnp.einsum('hmc,hcd->hmd', ch_ref[...], wv_ref[...],
                   preferred_element_type=jnp.float32)          # (H, B*M, d)

    # Scores over the full (B*N, B*M) grid; batches isolated by additive mask.
    # (scale is already folded into wq.)
    sim = jnp.einsum('hnd,hmd->hnm', q, k,
                     preferred_element_type=jnp.float32)        # (H, B*N, B*M)
    sim = sim + maskb_ref[...][None]

    sim = sim - jnp.max(sim, axis=-1, keepdims=True)
    p = jnp.exp(sim)
    p = p * pl.reciprocal(jnp.sum(p, axis=-1, keepdims=True), approx=True)

    o = jnp.einsum('hnm,hmd->hnd', p, v,
                   preferred_element_type=jnp.float32)          # (H, B*N, d)

    # Output projection accumulated per head (no lane concat / relayout).
    res = bo_ref[...] + jnp.dot(o[0], wo_ref[0],
                                preferred_element_type=jnp.float32)
    for h in range(1, HEADS):
        res = res + jnp.dot(o[h], wo_ref[h],
                            preferred_element_type=jnp.float32)
    o_ref[...] = res.astype(o_ref.dtype)                        # (B*N, Dq)


@jax.jit
def cross_attention(x, context, wq, wk, wv, wo, bo):
    """x: (B, N, QUERY_DIM), context: (B, M, CONTEXT_DIM). Weights follow the
    PyTorch nn.Linear convention: wq/wk/wv: (inner, in), wo: (Dq, inner)."""
    # ---- trace-time prep (free; constant-folded by XLA) ----
    # Per-head, pre-transposed to (in_features, DIM_HEAD); fold SCALE into Wq.
    wq_h = jnp.swapaxes(wq.reshape(HEADS, DIM_HEAD, QUERY_DIM), 1, 2) * SCALE
    wk_h = jnp.swapaxes(wk.reshape(HEADS, DIM_HEAD, CONTEXT_DIM), 1, 2)
    wv_h = jnp.swapaxes(wv.reshape(HEADS, DIM_HEAD, CONTEXT_DIM), 1, 2)
    wo_h = wo.T.reshape(HEADS, DIM_HEAD, QUERY_DIM)             # (H, d, Dq)
    bo2 = bo.reshape(1, QUERY_DIM)

    # Fold B into the sublane axis and broadcast over heads so the kernel's
    # projections are plain head-batched matmuls (no in-kernel relayouts).
    x_h = jnp.broadcast_to(x.reshape(1, B * N, QUERY_DIM),
                           (HEADS, B * N, QUERY_DIM))
    c_h = jnp.broadcast_to(context.reshape(1, B * M, CONTEXT_DIM),
                           (HEADS, B * M, CONTEXT_DIM))

    # Block-diagonal additive bias keeps attention within a batch element
    # while letting the kernel issue one full-size score matmul + softmax.
    row_b = jnp.arange(B * N, dtype=jnp.int32) // N
    col_b = jnp.arange(B * M, dtype=jnp.int32) // M
    mask_bias = jnp.where(row_b[:, None] == col_b[None, :],
                          0.0, NEG_INF).astype(jnp.float32)

    vmem = pl.BlockSpec(memory_space=pltpu.MemorySpace.VMEM)
    out = pl.pallas_call(
        cross_attention_kernel,
        out_shape=jax.ShapeDtypeStruct((B * N, QUERY_DIM), x.dtype),
        in_specs=[vmem] * 8,
        out_specs=vmem,
    )(x_h, c_h, mask_bias, wq_h, wk_h, wv_h, wo_h, bo2)
    return out.reshape(B, N, QUERY_DIM)


def cross_attention_ref(x, context, wq, wk, wv, wo, bo):
    """Pure-JAX reference mirroring the PyTorch forward (for correctness)."""
    q = x @ wq.T
    k = context @ wk.T
    v = context @ wv.T

    def split_heads(t):  # b n (h d) -> (b h) n d
        b, n, _ = t.shape
        return t.reshape(b, n, HEADS, DIM_HEAD).transpose(0, 2, 1, 3)\
                .reshape(b * HEADS, n, DIM_HEAD)

    q, k, v = map(split_heads, (q, k, v))
    sim = jnp.einsum('bid,bjd->bij', q, k) * SCALE
    attn = jax.nn.softmax(sim, axis=-1)
    out = jnp.einsum('bij,bjd->bid', attn, v)
    out = out.reshape(B, HEADS, N, DIM_HEAD).transpose(0, 2, 1, 3)\
             .reshape(B, N, INNER_DIM)
    return out @ wo.T + bo


if __name__ == "__main__":
    key = jax.random.PRNGKey(0)
    kx, k1, k2, k3, k4, k5 = jax.random.split(key, 6)

    x = jax.random.normal(kx, (B, N, QUERY_DIM), dtype=jnp.float32)
    # context=None branch in the PyTorch forward -> context = x
    context = x

    # deterministic parameter init (shapes from the module's __init__)
    wq = jax.random.normal(k1, (INNER_DIM, QUERY_DIM),   dtype=jnp.float32) * 0.05
    wk = jax.random.normal(k2, (INNER_DIM, CONTEXT_DIM), dtype=jnp.float32) * 0.05
    wv = jax.random.normal(k3, (INNER_DIM, CONTEXT_DIM), dtype=jnp.float32) * 0.05
    wo = jax.random.normal(k4, (QUERY_DIM, INNER_DIM),   dtype=jnp.float32) * 0.05
    bo = jax.random.normal(k5, (QUERY_DIM,),             dtype=jnp.float32) * 0.05

    out = cross_attention(x, context, wq, wk, wv, wo, bo)
    out = jax.block_until_ready(out)

    ref = cross_attention_ref(x, context, wq, wk, wv, wo, bo)
    assert out.shape == (B, N, QUERY_DIM)
    # tolerance slightly relaxed vs 1e-4 because of the EUP approx reciprocal
    assert jnp.allclose(out, ref, atol=1e-3, rtol=1e-3), "mismatch vs reference"

    # TODO(synk): nn.Dropout(p=0.0) and the unused `mask` argument are identity
    # at inference and intentionally not implemented.
    print("KERNEL_OK")
</pallas_src>

<mosaic_0001>
module attributes {stable_mosaic.version = 11 : i64} {
  func.func @cross_attention_kernel(%arg0: memref<2x16x32xf32, #tpu.memory_space<vmem>>, %arg1: memref<2x16x32xf32, #tpu.memory_space<vmem>>, %arg2: memref<16x16xf32, #tpu.memory_space<vmem>>, %arg3: memref<2x32x16xf32, #tpu.memory_space<vmem>>, %arg4: memref<2x32x16xf32, #tpu.memory_space<vmem>>, %arg5: memref<2x32x16xf32, #tpu.memory_space<vmem>>, %arg6: memref<2x16x32xf32, #tpu.memory_space<vmem>>, %arg7: memref<1x32xf32, #tpu.memory_space<vmem>>, %arg8: memref<16x32xf32, #tpu.memory_space<vmem>>) attributes {dimension_semantics = [], scalar_prefetch = 0 : i64, scratch_operands = 0 : i64, tpu.core_type = #tpu.core_type<tc>} {
    %c0 = arith.constant 0 : index
    %c0_0 = arith.constant 0 : index
    %c0_1 = arith.constant 0 : index
    %0 = vector.load %arg0[%c0, %c0_0, %c0_1] : memref<2x16x32xf32, #tpu.memory_space<vmem>>, vector<2x16x32xf32>
    %c0_2 = arith.constant 0 : index
    %c0_3 = arith.constant 0 : index
    %c0_4 = arith.constant 0 : index
    %1 = vector.load %arg3[%c0_2, %c0_3, %c0_4] : memref<2x32x16xf32, #tpu.memory_space<vmem>>, vector<2x32x16xf32>
    "tpu.trace_start"() <{level = 10 : i32, message = "hnc,hcd->hnd"}> : () -> ()
    %cst = arith.constant dense<0.000000e+00> : vector<2x16x16xf32>
    %2 = tpu.matmul %0, %1, %cst {dimension_numbers = #tpu.dot_dimension_numbers<[2], [1], [1], [2], [0, 0, 0, 1, 1, 2], [0], [0]>} : vector<2x16x32xf32>, vector<2x32x16xf32>, vector<2x16x16xf32> -> vector<2x16x16xf32>
    "tpu.trace_stop"() : () -> ()
    %c0_5 = arith.constant 0 : index
    %c0_6 = arith.constant 0 : index
    %c0_7 = arith.constant 0 : index
    %3 = vector.load %arg1[%c0_5, %c0_6, %c0_7] : memref<2x16x32xf32, #tpu.memory_space<vmem>>, vector<2x16x32xf32>
    %c0_8 = arith.constant 0 : index
    %c0_9 = arith.constant 0 : index
    %c0_10 = arith.constant 0 : index
    %4 = vector.load %arg4[%c0_8, %c0_9, %c0_10] : memref<2x32x16xf32, #tpu.memory_space<vmem>>, vector<2x32x16xf32>
    "tpu.trace_start"() <{level = 10 : i32, message = "hmc,hcd->hmd"}> : () -> ()
    %cst_11 = arith.constant dense<0.000000e+00> : vector<2x16x16xf32>
    %5 = tpu.matmul %3, %4, %cst_11 {dimension_numbers = #tpu.dot_dimension_numbers<[2], [1], [1], [2], [0, 0, 0, 1, 1, 2], [0], [0]>} : vector<2x16x32xf32>, vector<2x32x16xf32>, vector<2x16x16xf32> -> vector<2x16x16xf32>
    "tpu.trace_stop"() : () -> ()
    %c0_12 = arith.constant 0 : index
    %c0_13 = arith.constant 0 : index
    %c0_14 = arith.constant 0 : index
    %6 = vector.load %arg1[%c0_12, %c0_13, %c0_14] : memref<2x16x32xf32, #tpu.memory_space<vmem>>, vector<2x16x32xf32>
    %c0_15 = arith.constant 0 : index
    %c0_16 = arith.constant 0 : index
    %c0_17 = arith.constant 0 : index
    %7 = vector.load %arg5[%c0_15, %c0_16, %c0_17] : memref<2x32x16xf32, #tpu.memory_space<vmem>>, vector<2x32x16xf32>
    "tpu.trace_start"() <{level = 10 : i32, message = "hmc,hcd->hmd"}> : () -> ()
    %cst_18 = arith.constant dense<0.000000e+00> : vector<2x16x16xf32>
    %8 = tpu.matmul %6, %7, %cst_18 {dimension_numbers = #tpu.dot_dimension_numbers<[2], [1], [1], [2], [0, 0, 0, 1, 1, 2], [0], [0]>} : vector<2x16x32xf32>, vector<2x32x16xf32>, vector<2x16x16xf32> -> vector<2x16x16xf32>
    "tpu.trace_stop"() : () -> ()
    "tpu.trace_start"() <{level = 10 : i32, message = "hnd,hmd->hnm"}> : () -> ()
    %cst_19 = arith.constant dense<0.000000e+00> : vector<2x16x16xf32>
    %9 = tpu.matmul %2, %5, %cst_19 {dimension_numbers = #tpu.dot_dimension_numbers<[2], [2], [1], [1], [0, 0, 0, 1, 1, 1], [0], [0]>} : vector<2x16x16xf32>, vector<2x16x16xf32>, vector<2x16x16xf32> -> vector<2x16x16xf32>
    "tpu.trace_stop"() : () -> ()
    %c0_20 = arith.constant 0 : index
    %c0_21 = arith.constant 0 : index
    %10 = vector.load %arg2[%c0_20, %c0_21] : memref<16x16xf32, #tpu.memory_space<vmem>>, vector<16x16xf32>
    %11 = vector.shape_cast %10 : vector<16x16xf32> to vector<1x16x16xf32>
    %12 = vector.broadcast %11 : vector<1x16x16xf32> to vector<2x16x16xf32>
    %13 = arith.addf %9, %12 : vector<2x16x16xf32>
    %cst_22 = arith.constant dense<0xFF800000> : vector<2x16xf32>
    %14 = vector.multi_reduction <maximumf>, %13, %cst_22 [2] : vector<2x16x16xf32> to vector<2x16xf32>
    %15 = vector.shape_cast %14 : vector<2x16xf32> to vector<2x16x1xf32>
    %16 = vector.broadcast %15 : vector<2x16x1xf32> to vector<2x16x16xf32>
    %17 = arith.subf %13, %16 : vector<2x16x16xf32>
    %18 = math.exp %17 : vector<2x16x16xf32>
    %cst_23 = arith.constant dense<0.000000e+00> : vector<2x16xf32>
    %19 = vector.multi_reduction <add>, %18, %cst_23 [2] : vector<2x16x16xf32> to vector<2x16xf32>
    %20 = vector.shape_cast %19 : vector<2x16xf32> to vector<2x16x1xf32>
    %21 = tpu.reciprocal %20 {approx = true} : vector<2x16x1xf32> -> vector<2x16x1xf32>
    %22 = vector.broadcast %21 : vector<2x16x1xf32> to vector<2x16x16xf32>
    %23 = arith.mulf %18, %22 : vector<2x16x16xf32>
    "tpu.trace_start"() <{level = 10 : i32, message = "hnm,hmd->hnd"}> : () -> ()
    %cst_24 = arith.constant dense<0.000000e+00> : vector<2x16x16xf32>
    %24 = tpu.matmul %23, %8, %cst_24 {dimension_numbers = #tpu.dot_dimension_numbers<[2], [1], [1], [2], [0, 0, 0, 1, 1, 2], [0], [0]>} : vector<2x16x16xf32>, vector<2x16x16xf32>, vector<2x16x16xf32> -> vector<2x16x16xf32>
    "tpu.trace_stop"() : () -> ()
    %c0_25 = arith.constant 0 : index
    %c0_26 = arith.constant 0 : index
    %25 = vector.load %arg7[%c0_25, %c0_26] : memref<1x32xf32, #tpu.memory_space<vmem>>, vector<1x32xf32>
    %26 = vector.extract_strided_slice %24 {offsets = [0, 0, 0], sizes = [1, 16, 16], strides = [1, 1, 1]} : vector<2x16x16xf32> to vector<1x16x16xf32>
    %27 = vector.shape_cast %26 : vector<1x16x16xf32> to vector<16x16xf32>
    %c0_27 = arith.constant 0 : index
    %c0_28 = arith.constant 0 : index
    %c0_29 = arith.constant 0 : index
    %28 = vector.load %arg6[%c0_27, %c0_28, %c0_29] : memref<2x16x32xf32, #tpu.memory_space<vmem>>, vector<1x16x32xf32>
    %29 = vector.shape_cast %28 : vector<1x16x32xf32> to vector<16x32xf32>
    %cst_30 = arith.constant dense<0.000000e+00> : vector<16x32xf32>
    %30 = tpu.matmul %27, %29, %cst_30 {dimension_numbers = #tpu.dot_dimension_numbers<[1], [0], [0], [1], [0, 0, 1, 1], [], []>} : vector<16x16xf32>, vector<16x32xf32>, vector<16x32xf32> -> vector<16x32xf32>
    %31 = vector.broadcast %25 : vector<1x32xf32> to vector<16x32xf32>
    %32 = arith.addf %31, %30 : vector<16x32xf32>
    %33 = vector.extract_strided_slice %24 {offsets = [1, 0, 0], sizes = [1, 16, 16], strides = [1, 1, 1]} : vector<2x16x16xf32> to vector<1x16x16xf32>
    %34 = vector.shape_cast %33 : vector<1x16x16xf32> to vector<16x16xf32>
    %c1 = arith.constant 1 : index
    %c0_31 = arith.constant 0 : index
    %c0_32 = arith.constant 0 : index
    %35 = vector.load %arg6[%c1, %c0_31, %c0_32] : memref<2x16x32xf32, #tpu.memory_space<vmem>>, vector<1x16x32xf32>
    %36 = vector.shape_cast %35 : vector<1x16x32xf32> to vector<16x32xf32>
    %cst_33 = arith.constant dense<0.000000e+00> : vector<16x32xf32>
    %37 = tpu.matmul %34, %36, %cst_33 {dimension_numbers = #tpu.dot_dimension_numbers<[1], [0], [0], [1], [0, 0, 1, 1], [], []>} : vector<16x16xf32>, vector<16x32xf32>, vector<16x32xf32> -> vector<16x32xf32>
    %38 = arith.addf %32, %37 : vector<16x32xf32>
    %c0_34 = arith.constant 0 : index
    %c0_35 = arith.constant 0 : index
    %39 = vector.load %arg8[%c0_34, %c0_35] : memref<16x32xf32, #tpu.memory_space<vmem>>, vector<16x32xf32>
    tpu.vector_store %arg8[%c0_34, %c0_35], %38 {strides = array<i32>} : memref<16x32xf32, #tpu.memory_space<vmem>>, vector<16x32xf32>,
    return
  }
}

</mosaic_0001>

<bundles_post_ra>
// kernel: cross_attention.1
= control target key start
LH: loop header
LB: loop body
LE: loop exit
PB: predicated region body
PF: predicated region fallthrough
CT: control target
= control target key end

     0   :  { %vm42_vm0 = vcmask 261120   ;;  %s797_s0 = inlined_call_operand.vmem [shape: f32[2,16,32], index: 0, kind: input, shape index: {}]   ;;  %s798_s1 = inlined_call_operand.vmem [shape: f32[2,16,32], index: 1, kind: input, shape index: {}]   ;;  %s799_s2 = inlined_call_operand.vmem [shape: f32[16,16], index: 2, kind: input, shape index: {}]   ;;  %s800_s3 = inlined_call_operand.vmem [shape: f32[2,32,16], index: 3, kind: input, shape index: {}]   ;;  %s801_s4 = inlined_call_operand.vmem [shape: f32[2,32,16], index: 4, kind: input, shape index: {}]   ;;  %s802_s5 = inlined_call_operand.vmem [shape: f32[2,32,16], index: 5, kind: input, shape index: {}]   ;;  %s803_s6 = inlined_call_operand.vmem [shape: f32[2,16,32], index: 6, kind: input, shape index: {}]   ;;  %s804_s7 = inlined_call_operand.vmem [shape: f32[1,32], index: 7, kind: input, shape index: {}]   ;;  %s805_s8 = inlined_call_operand.hbm [shape: f32[16,32], index: 8, kind: output, shape index: {}]  }
   0x1   :  { %v108_v0 = vld [vmem:[%s801_s4 + $0x18] sm:$0xff]  ;;  %v107_v2 = vld [vmem:[%s801_s4 + $0x10] sm:$0xff]  ;;  %v106_v4 = vld [vmem:[%s801_s4 + $0x8] sm:$0xff] }
   0x2   :  { %v112_v1 = vld [vmem:[%s801_s4 + $0x38] sm:$0xff]  ;;  %131 = vmatpush.msra.mxu2 %v108_v0  ;;  %v111_v3 = vld [vmem:[%s801_s4 + $0x30] sm:$0xff]  ;;  %v110_v5 = vld [vmem:[%s801_s4 + $0x28] sm:$0xff] }
   0x3   :  { %160 = vmatpush.msra.mxu3 %v112_v1  ;;  %v105_v6 = vld [vmem:[%s801_s4] sm:$0xff]  ;;  %v37_v8 = vld [vmem:[%s800_s3 + $0x18] sm:$0xff]  ;;  %v666_v10 = vld [vmem:[%s798_s1 + $0x10] sm:$0xff] }
   0x4   :  { %132 = vmatpush.msra.mxu2 %v107_v2  ;;  %v109_v7 = vld [vmem:[%s801_s4 + $0x20] sm:$0xff]  ;;  %v41_v11 = vld [vmem:[%s800_s3 + $0x38] sm:$0xff]  ;;  %61 = vmatpush.msra.mxu0 %v37_v8  ;;  %v36_v12 = vld [vmem:[%s800_s3 + $0x10] sm:$0xff] }
   0x5   :  { %161 = vmatpush.msra.mxu3 %v111_v3  ;;  %v661_v9 = vld [vmem:[%s798_s1] sm:$0xff]  ;;  %90 = vmatpush.msra.mxu1 %v41_v11  ;;  %v40_v13 = vld [vmem:[%s800_s3 + $0x30] sm:$0xff]  ;;  %v35_v14 = vld [vmem:[%s800_s3 + $0x8] sm:$0xff] }
   0x6   :  { %133 = vmatpush.msra.mxu2 %v106_v4  ;;  %v39_v15 = vld [vmem:[%s800_s3 + $0x28] sm:$0xff] }
   0x7   :  { %162 = vmatpush.msra.mxu3 %v110_v5 }
   0x8   :  { %134 = vmatpush.msra.mxu2 %v105_v6 }
   0x9   :  { %163 = vmatpush.msra.mxu3 %v109_v7  ;;  %511 = vmatmul.msk.f32.vlgmr.msra.gmra.mxu2 %vm42_vm0, %v661_v9 }
   0xa   :  { %513 = vmatmul.msk.f32.vlgmr.msra.gmra.mxu3 %vm42_vm0, %v666_v10 }
   0xb   :  { %13 = vsyncpa [#allocation3], 0  ;;  %62 = vmatpush.msra.mxu0 %v36_v12  ;;  %91 = vmatpush.msra.mxu1 %v40_v13  ;;  %v34_v16 = vld [vmem:[%s800_s3] sm:$0xff]  ;;  %v32_v19 = vld [vmem:[%s797_s0 + $0x10] sm:$0xff]  ;;  %vm243_vm1 = vcmask 130048   ;;  %s495_s9 = sshll.u32 %s805_s8, 4  ;;  %s496_s9 = int_to_ptr.hbm [resolvable:$true] %s495_s9 }
   0xc   :  { %v38_v17 = vld [vmem:[%s800_s3 + $0x20] sm:$0xff]  ;;  %v102_v20 = vld [vmem:[%s798_s1 + $0x8] sm:$0xff]  ;;  %v104_v21 = vld [vmem:[%s798_s1 + $0x18] sm:$0xff]  ;;  %s585_s10 = smov 8  }
   0xd   :  { %63 = vmatpush.msra.mxu0 %v35_v14  ;;  %v30_v18 = vld [vmem:[%s797_s0] sm:$0xff]  ;;  %92 = vmatpush.msra.mxu1 %v39_v15  ;;  %v31_v22 = vld [vmem:[%s797_s0 + $0x8] sm:$0xff]  ;;  %v33_v23 = vld [vmem:[%s797_s0 + $0x18] sm:$0xff] }
   0xe   :  { %v178_v32 = vld [vmem:[%s802_s5 + $0x18] sm:$0xff]  ;;  %v177_v33 = vld [vmem:[%s802_s5 + $0x10] sm:$0xff]  ;;  %v176_v36 = vld [vmem:[%s802_s5 + $0x8] sm:$0xff] }
   0xf   :  { %64 = vmatpush.msra.mxu0 %v34_v16  ;;  %93 = vmatpush.msra.mxu1 %v38_v17  ;;  %v182_v34 = vld [vmem:[%s802_s5 + $0x38] sm:$0xff]  ;;  %v181_v35 = vld [vmem:[%s802_s5 + $0x30] sm:$0xff]  ;;  %v180_v37 = vld [vmem:[%s802_s5 + $0x28] sm:$0xff] }
  0x10   :  { %507 = vmatmul.msk.f32.vlgmr.msra.gmra.mxu0 %vm42_vm0, %v30_v18  ;;  %509 = vmatmul.msk.f32.vlgmr.msra.gmra.mxu1 %vm42_vm0, %v32_v19  ;;  %v175_v38 = vld [vmem:[%s802_s5] sm:$0xff]  ;;  %v242_v46 = vld [vmem:[%s799_s2 + $0x8] sm:$0xff] }
  0x11   :  { %512 = vmatmul.msk.f32.gmra.mxu2 %vm42_vm0, %v102_v20  ;;  %201 = vmatpush.msrb.mxu0 %v178_v32  ;;  %v179_v39 = vld [vmem:[%s802_s5 + $0x20] sm:$0xff]  ;;  %v418_v14 = vld [vmem:[%s803_s6 + $0x8] sm:$0xff] }
  0x12   :  { %514 = vmatmul.msk.f32.gmra.mxu3 %vm42_vm0, %v104_v21  ;;  %230 = vmatpush.msrb.mxu1 %v182_v34  ;;  %v241_v40 = vld [vmem:[%s799_s2] sm:$0xff] }
  0x13   :  { %202 = vmatpush.msrb.mxu0 %v177_v33 }
  0x14   :  { %231 = vmatpush.msrb.mxu1 %v181_v35  ;;  %v540_v35 = vld [vmem:[%s804_s7] ss:$0 sm:$0xff]  ;;  %s584_s7 = smov 128  }
  0x15   :  { %203 = vmatpush.msrb.mxu0 %v176_v36 }
  0x16   :  { %232 = vmatpush.msrb.mxu1 %v180_v37 }
  0x17   :  { %204 = vmatpush.msrb.mxu0 %v175_v38 }
  0x18   :  { %508 = vmatmul.msk.f32.gmra.mxu0 %vm42_vm0, %v31_v22  ;;  %510 = vmatmul.msk.f32.gmra.mxu1 %vm42_vm0, %v33_v23 }
  0x19   :  { %233 = vmatpush.msrb.mxu1 %v179_v39 }
  0x20   :  { %515 = vmatmul.msk.f32.vlgmr.msrb.gmra.mxu0 %vm42_vm0, %v661_v9  ;;  %517 = vmatmul.msk.f32.vlgmr.msrb.gmra.mxu1 %vm42_vm0, %v666_v10 }
  0x28   :  { %516 = vmatmul.msk.f32.gmra.mxu0 %vm42_vm0, %v102_v20  ;;  %518 = vmatmul.msk.f32.gmra.mxu1 %vm42_vm0, %v104_v21 }
  0x8c   :  { %v136_v24 = vpop.f32.mrf.mxu2 }
  0x8d   :  { %v165_v25 = vpop.f32.mrf.mxu3  ;;  %v66_v28 = vpop.f32.mrf.mxu0 }
  0x8e   :  { %v95_v29 = vpop.f32.mrf.mxu1 }
  0x94   :  { %v139_v26 = vpop.f32.mrf.mxu2 }
  0x95   :  { %v168_v27 = vpop.f32.mrf.mxu3  ;;  %519 = vmatpush.xpose.msk.msrb.mxu2 %vm243_vm1, %v139_v26  ;;  %v69_v30 = vpop.f32.mrf.mxu0 }
  0x96   :  { %523 = vmatpush.xpose.msk.msrb.mxu3 %vm243_vm1, %v168_v27  ;;  %v98_v31 = vpop.f32.mrf.mxu1  ;;  %v417_v27 = vld [vmem:[%s803_s6] sm:$0xff] }
  0x99   :  { %520 = vmatpush.xpose.msk.msrb.mxu2 %vm243_vm1, %v136_v24 }
  0x9a   :  { %524 = vmatpush.xpose.msk.msrb.mxu3 %vm243_vm1, %v165_v25 }
  0x9c   :  { %521 = vmatmul.msk.f32.vlgmr.msrb.gmra.mxu2 %vm243_vm1, %v66_v28  ;;  %v534_v28 = vld [vmem:[%s803_s6 + $0x18] sm:$0xff] }
  0x9d   :  { %525 = vmatmul.msk.f32.vlgmr.msrb.gmra.mxu3 %vm243_vm1, %v95_v29  ;;  %v206_v56 = vpop.f32.mrf.mxu0  ;;  %439 = vmatpush.msra.mxu2 %v418_v14  ;;  %v533_v29 = vld [vmem:[%s803_s6 + $0x10] sm:$0xff]  ;;  %s583_s6 = smov [#allocation2]  }
  0x9e   :  { %v235_v57 = vpop.f32.mrf.mxu1  ;;  %476 = vmatpush.msra.mxu3 %v534_v28  ;;  %s493_s4 = sshll.u32 %s583_s6, 4  ;;  %s494_s4 = int_to_ptr.vmem [resolvable:$true] %s493_s4 }
  0x9f   :  { %440 = vmatpush.msra.mxu2 %v417_v27 }
  0xa0   :  { %477 = vmatpush.msra.mxu3 %v533_v29 }
  0xa4   :  { %522 = vmatmul.msk.f32.gmra.mxu2 %vm243_vm1, %v69_v30 }
  0xa5   :  { %526 = vmatmul.msk.f32.gmra.mxu3 %vm243_vm1, %v98_v31  ;;  %v209_v63 = vpop.f32.mrf.mxu0 }
  0xa6   :  { %378 = vmatpush.msra.mxu0 %v209_v63  ;;  %v238_v3 = vpop.f32.mrf.mxu1 }
  0xa7   :  { %407 = vmatpush.msra.mxu1 %v238_v3 }
  0xa8   :  { %379 = vmatpush.msra.mxu0 %v206_v56 }
  0xa9   :  { %408 = vmatpush.msra.mxu1 %v235_v57 }
 0x11f   :  { %v273_v41 = vpop.f32.mrf.mxu2 }
 0x120   :  { %v308_v42 = vpop.f32.mrf.mxu3  ;;  %v274_v43 = vadd.f32 %v273_v41, %v241_v40 }
 0x121   :  { %v309_v45 = vadd.f32 %v308_v42, %v241_v40 }
 0x122   :  { %v314_v44 = vsel %vm243_vm1, %v274_v43, -inf }
 0x123   :  { %315 = vmax.xlane.f32.xlu0 %v314_v44  ;;  %v320_v49 = vsel %vm243_vm1, %v309_v45, -inf }
 0x127   :  { %v276_v47 = vpop.f32.mrf.mxu2 }
 0x128   :  { %v277_v48 = vadd.f32 %v276_v47, %v242_v46  ;;  %v311_v50 = vpop.f32.mrf.mxu3 }
 0x129   :  { %v312_v52 = vadd.f32 %v311_v50, %v242_v46 }
 0x12a   :  { %v317_v51 = vsel %vm243_vm1, %v277_v48, -inf }
 0x12b   :  { %321 = vmax.xlane.f32.xlu0 %v320_v49  ;;  %318 = vmax.xlane.f32.xlu1 %v317_v51  ;;  %v323_v53 = vsel %vm243_vm1, %v312_v52, -inf }
 0x133   :  { %324 = vmax.xlane.f32.xlu1 %v323_v53 }
 0x196   :  { %v316_v54 = vpop.xlane.xlu0 %315 }
 0x197   :  { %v326_v55 = vsub.f32 %v274_v43, %v316_v54 }
 0x199   :  { %v330_v58 = vmul.f32 1.442695, %v326_v55 }
 0x19b   :  { %541 = vpow2.f32 %v330_v58 }
 0x19e   :  { %v322_v59 = vpop.xlane.xlu0 %321  ;;  %v319_v60 = vpop.xlane.xlu1 %318 }
 0x19f   :  { %v328_v61 = vsub.f32 %v309_v45, %v322_v59  ;;  %v327_v62 = vsub.f32 %v277_v48, %v319_v60 }
 0x1a1   :  { %v542_v0 = vpop.eup %541  ;;  %v334_v1 = vmul.f32 1.442695, %v328_v61  ;;  %v332_v2 = vmul.f32 1.442695, %v327_v62 }
 0x1a2   :  { %v338_v4 = vsel %vm243_vm1, %v542_v0, 0.0 }
 0x1a3   :  { %543 = vpow2.f32 %v334_v1  ;;  %339 = vadd.xlane.f32.xlu2 %v338_v4 }
 0x1a4   :  { %545 = vpow2.f32 %v332_v2 }
 0x1a6   :  { %v325_v5 = vpop.xlane.xlu1 %324 }
 0x1a7   :  { %v329_v6 = vsub.f32 %v312_v52, %v325_v5 }
 0x1a9   :  { %v544_v7 = vpop.eup %543  ;;  %v336_v8 = vmul.f32 1.442695, %v329_v6 }
 0x1aa   :  { %v546_v9 = vpop.eup %545  ;;  %v344_v10 = vsel %vm243_vm1, %v544_v7, 0.0 }
 0x1ab   :  { %547 = vpow2.f32 %v336_v8  ;;  %345 = vadd.xlane.f32.xlu2 %v344_v10  ;;  %v341_v11 = vsel %vm243_vm1, %v546_v9, 0.0 }
 0x1ac   :  { %342 = vadd.xlane.f32.xlu0 %v341_v11 }
 0x1b1   :  { %v548_v12 = vpop.eup %547 }
 0x1b2   :  { %v347_v13 = vsel %vm243_vm1, %v548_v12, 0.0 }
 0x1b3   :  { %348 = vadd.xlane.f32.xlu1 %v347_v13 }
 0x216   :  { %v340_v15 = vpop.xlane.xlu2 %339 }
 0x217   :  { %549 = vrcp.f32 %v340_v15 }
 0x21d   :  { %v550_v16 = vpop.eup %549 }
 0x21e   :  { %v354_v17 = vmul.f32 %v550_v16, %v542_v0  ;;  %v346_v18 = vpop.xlane.xlu2 %345 }
 0x21f   :  { %551 = vrcp.f32 %v346_v18  ;;  %v343_v19 = vpop.xlane.xlu0 %342 }
 0x220   :  { %553 = vrcp.f32 %v343_v19  ;;  %527 = vmatmul.msk.f32.vlgmr.msra.gmra.mxu0 %vm243_vm1, %v354_v17 }
 0x225   :  { %v552_v20 = vpop.eup %551 }
 0x226   :  { %v554_v21 = vpop.eup %553  ;;  %v356_v22 = vmul.f32 %v552_v20, %v544_v7  ;;  %v349_v23 = vpop.xlane.xlu1 %348 }
 0x227   :  { %555 = vrcp.f32 %v349_v23  ;;  %v355_v24 = vmul.f32 %v554_v21, %v546_v9 }
 0x228   :  { %529 = vmatmul.msk.f32.vlgmr.msra.gmra.mxu1 %vm243_vm1, %v356_v22 }
 0x229   :  { %528 = vmatmul.msk.f32.gmra.mxu0 %vm243_vm1, %v355_v24 }
 0x22d   :  { %v556_v25 = vpop.eup %555 }
 0x22e   :  { %v357_v26 = vmul.f32 %v556_v25, %v548_v12 }
 0x230   :  { %530 = vmatmul.msk.f32.gmra.mxu1 %vm243_vm1, %v357_v26 }
 0x29d   :  { %v381_v30 = vpop.f32.mrf.mxu0 }
 0x29e   :  { %531 = vmatmul.msk.f32.vlgmr.msra.gmra.mxu2 %vm243_vm1, %v381_v30 }
 0x2a5   :  { %v410_v31 = vpop.f32.mrf.mxu1 }
 0x2a6   :  { %v384_v32 = vpop.f32.mrf.mxu0  ;;  %535 = vmatmul.msk.f32.vlgmr.msra.gmra.mxu3 %vm243_vm1, %v410_v31 }
 0x2a7   :  { %532 = vmatmul.msk.f32.gmra.mxu2 %vm243_vm1, %v384_v32 }
 0x2ad   :  { %v413_v33 = vpop.f32.mrf.mxu1 }
 0x2ae   :  { %536 = vmatmul.msk.f32.gmra.mxu3 %vm243_vm1, %v413_v33 }
 0x321   :  { %v442_v34 = vpop.f32.mrf.mxu2 }
 0x322   :  { %v451_v36 = vadd.f32 %v540_v35, %v442_v34 }
 0x329   :  { %v479_v37 = vpop.f32.mrf.mxu3 }
 0x32a   :  { %v485_v38 = vadd.f32 %v479_v37, %v451_v36  ;;  %v445_v39 = vpop.f32.mrf.mxu2 }
 0x32b   :  { %v452_v40 = vadd.f32 %v540_v35, %v445_v39 }
 0x32c   :  { %487 = vst.msk [vmem:[#allocation2] sm:$0xff] %vm42_vm0, %v485_v38 }
 0x331   :  { %v482_v41 = vpop.f32.mrf.mxu3 }
 0x332   :  { %v486_v42 = vadd.f32 %v482_v41, %v452_v40 }
 0x334   :  { %488 = vst.msk [vmem:[#allocation2 + $0x8] sm:$0xff] %vm42_vm0, %v486_v42 }
 0x335   :  { %501 = dma.vmem_to_hbm [thread:$0]  %s494_s4, 256, %s496_s9, [#allocation3], %s584_s7, %s584_s7, %s585_s10  }
 0x336   :  { %581 = dma.done.wait [#allocation3], 256  }
 0x337   :  { %582 = vsyncadd [#allocation3], 4294967040 }
 0x338   :  { %506 = vsyncpa [#allocation3], 1 }

</bundles_post_ra>
